<compile_context>
chip_gen: v6e
topology: v6e:2x2x1
jax: 0.10.0
libtpu: 0.0.40
codegen_flags: <defaults>
</compile_context>

<pallas_src>
from typing import NamedTuple, Tuple

import jax
import jax.numpy as jnp
from jax.experimental import pallas as pl
from jax.experimental.pallas import tpu as pltpu

LANE = 128


def _round_up(n, m):
    return ((n + m - 1) // m) * m


def dqn_kernel(x_ref, w1_ref, b1_ref, w2_ref, b2_ref, w3_ref, b3_ref,
               w4_ref, b4_ref, o_ref):
    # fc1 + relu: cast the f32 x tile to bf16 in-kernel (VPU, free vs. a wrapper
    # pass); matmuls run bf16 on the MXU with f32 accumulation, bias+ReLU in f32.
    h = jnp.dot(x_ref[...].astype(jnp.bfloat16), w1_ref[...],
                preferred_element_type=jnp.float32)
    h = jnp.maximum(h + b1_ref[...], 0.0)
    # fc2 + relu
    h = jnp.dot(h.astype(jnp.bfloat16), w2_ref[...],
                preferred_element_type=jnp.float32)
    h = jnp.maximum(h + b2_ref[...], 0.0)
    # fc3 + relu
    h = jnp.dot(h.astype(jnp.bfloat16), w3_ref[...],
                preferred_element_type=jnp.float32)
    h = jnp.maximum(h + b3_ref[...], 0.0)
    # fc4 (no activation). Output block is lane-padded to 128 and stored as bf16:
    # lane-dense unmasked vst at half the f32 writeback bytes.
    h = jnp.dot(h.astype(jnp.bfloat16), w4_ref[...],
                preferred_element_type=jnp.float32)
    o_ref[...] = (h + b4_ref[...]).astype(o_ref.dtype)


class PreparedDQN(NamedTuple):
    tensors: Tuple[jax.Array, ...]   # (w1,b1,w2,b2,w3,b3,w4_pad,b4_pad)
    state_size: int
    hidden_dim: int
    action_size: int
    action_pad: int


def prepare_params(params):
    """One-time parameter prep (hoisted out of the per-call path):
    bf16 weights, f32 biases, final layer lane-padded A -> multiple of 128."""
    (w1, b1), (w2, b2), (w3, b3), (w4, b4) = params
    S, H = w1.shape
    A = w4.shape[1]
    A_pad = _round_up(A, LANE)
    w4_pad = jnp.zeros((H, A_pad), jnp.bfloat16).at[:, :A].set(
        w4.astype(jnp.bfloat16))
    b4_pad = jnp.zeros((1, A_pad), jnp.float32).at[:, :A].set(b4)
    tensors = (
        w1.astype(jnp.bfloat16), b1.astype(jnp.float32),
        w2.astype(jnp.bfloat16), b2.astype(jnp.float32),
        w3.astype(jnp.bfloat16), b3.astype(jnp.float32),
        w4_pad, b4_pad,
    )
    return PreparedDQN(tensors, S, H, A, A_pad)


def dqn_forward(x, prepared: PreparedDQN, *, tile_b=512, core_parallel=False):
    """Whole 4-layer MLP in one Pallas kernel, batch tiled over a 1-D grid."""
    S, H = prepared.state_size, prepared.hidden_dim
    A, A_pad = prepared.action_size, prepared.action_pad
    B = x.shape[0]
    assert x.shape[1] == S

    # --- batch tiling / padding (tile is a multiple of 16 rows: bf16 sublane pack)
    tile_b = max(16, _round_up(min(tile_b, B), 16))
    B_pad = _round_up(B, tile_b)
    if B_pad != B:
        x = jnp.pad(x, ((0, B_pad - B), (0, 0)))
    grid = (B_pad // tile_b,)

    # --- BlockSpecs ---------------------------------------------------------
    x_spec = pl.BlockSpec((tile_b, S), lambda i: (i, 0))
    out_spec = pl.BlockSpec((tile_b, A_pad), lambda i: (i, 0))

    def resident(shape):
        # Constant index_map: weight/bias block never changes -> fetched once and
        # kept VMEM-resident across batch tiles.
        return pl.BlockSpec(shape, lambda i: (0, 0))

    in_specs = [
        x_spec,
        resident((S, H)), resident((1, H)),
        resident((H, H)), resident((1, H)),
        resident((H, H)), resident((1, H)),
        resident((H, A_pad)), resident((1, A_pad)),
    ]

    # --- cost estimate so XLA schedules surrounding ops around the kernel ----
    flops = 2 * B_pad * (S * H + 2 * H * H + H * A_pad)
    bytes_accessed = (
        B_pad * S * 4                              # x (f32, cast in-kernel)
        + (S * H + 2 * H * H + H * A_pad) * 2      # weights (bf16)
        + (3 * H + A_pad) * 4                      # biases (f32)
        + B_pad * A_pad * 2                        # output (bf16)
    )

    # On v7x pass core_parallel=True (and size tile_b so each TensorCore gets >= 2
    # tiles) to shard the batch axis across both TCs; "parallel" is the portable
    # default for single-TC v5e/v6e.
    semantics = (pltpu.CORE_PARALLEL,) if core_parallel else ("parallel",)

    out_pad = pl.pallas_call(
        dqn_kernel,
        out_shape=jax.ShapeDtypeStruct((B_pad, A_pad), jnp.bfloat16),
        grid=grid,
        in_specs=in_specs,
        out_specs=out_spec,
        compiler_params=pltpu.CompilerParams(dimension_semantics=semantics),
        cost_estimate=pl.CostEstimate(
            flops=flops, transcendentals=0, bytes_accessed=bytes_accessed),
    )(x, *prepared.tensors)

    # TODO(synk): for pure greedy inference, fuse argmax over the A real action
    # lanes into the kernel and emit int32 actions instead of Q-values, removing
    # this slice and ~all of the output writeback.
    return out_pad[:B, :A].astype(jnp.float32)


# ------------------------------ reference / init ------------------------------
def init_linear(key, in_dim, out_dim):
    """Matches nn.Linear's default uniform(-1/sqrt(in), 1/sqrt(in)) init.
    Weight stored as (in_dim, out_dim); bias as (1, out_dim) for 2-D broadcast."""
    kw, kb = jax.random.split(key)
    bound = 1.0 / jnp.sqrt(in_dim)
    w = jax.random.uniform(kw, (in_dim, out_dim), jnp.float32, -bound, bound)
    b = jax.random.uniform(kb, (1, out_dim), jnp.float32, -bound, bound)
    return w, b


def make_params(key, state_size, action_size, hidden_dim):
    k1, k2, k3, k4 = jax.random.split(key, 4)
    return (
        init_linear(k1, state_size, hidden_dim),
        init_linear(k2, hidden_dim, hidden_dim),
        init_linear(k3, hidden_dim, hidden_dim),
        init_linear(k4, hidden_dim, action_size),
    )


def dqn_reference(x, params, use_bf16):
    """Pure-JAX reference (mirrors the PyTorch forward).
    use_bf16=True mirrors the kernel's numerics (bf16 matmul inputs, f32 accum)."""
    (w1, b1), (w2, b2), (w3, b3), (w4, b4) = params

    def mm(a, w):
        if use_bf16:
            return jnp.dot(a.astype(jnp.bfloat16), w.astype(jnp.bfloat16),
                           preferred_element_type=jnp.float32)
        return jnp.dot(a, w, preferred_element_type=jnp.float32)

    h = jnp.maximum(mm(x, w1) + b1, 0.0)
    h = jnp.maximum(mm(h, w2) + b2, 0.0)
    h = jnp.maximum(mm(h, w3) + b3, 0.0)
    return mm(h, w4) + b4


if __name__ == "__main__":
    # Model dims match the module (hidden_dim=256); batch small but large enough
    # to exercise the grid (tile_b=128 -> grid=(2,)).
    batch, state_size, action_size, hidden_dim = 256, 16, 4, 256

    key = jax.random.PRNGKey(0)
    kx, kp = jax.random.split(key)
    x = jax.random.normal(kx, (batch, state_size), jnp.float32)
    params = make_params(kp, state_size, action_size, hidden_dim)

    prepared = prepare_params(params)        # one-time prep, reused across calls
    jax.block_until_ready(prepared.tensors)

    out = dqn_forward(x, prepared, tile_b=128)
    jax.block_until_ready(out)
    assert out.shape == (batch, action_size)

    # Tight check against a reference with identical numerics
    # (bf16 MXU inputs, f32 accumulation, bf16 final store).
    ref_bf16 = dqn_reference(x, params, use_bf16=True)
    ref_bf16_q = ref_bf16.astype(jnp.bfloat16).astype(jnp.float32)
    assert jnp.allclose(out, ref_bf16_q, atol=1e-2, rtol=1e-2)

    # Loose check against the full-f32 reference (bounds bf16 quantization error).
    ref_f32 = dqn_reference(x, params, use_bf16=False)
    assert jnp.allclose(out, ref_f32, atol=6e-2, rtol=6e-2)

    print("KERNEL_OK")
</pallas_src>

<mosaic_0001>
module attributes {stable_mosaic.version = 11 : i64} {
  func.func @dqn_kernel(%arg0: i32, %arg1: memref<128x16xf32, #tpu.memory_space<vmem>>, %arg2: memref<16x256xbf16, #tpu.memory_space<vmem>>, %arg3: memref<1x256xf32, #tpu.memory_space<vmem>>, %arg4: memref<256x256xbf16, #tpu.memory_space<vmem>>, %arg5: memref<1x256xf32, #tpu.memory_space<vmem>>, %arg6: memref<256x256xbf16, #tpu.memory_space<vmem>>, %arg7: memref<1x256xf32, #tpu.memory_space<vmem>>, %arg8: memref<256x128xbf16, #tpu.memory_space<vmem>>, %arg9: memref<1x128xf32, #tpu.memory_space<vmem>>, %arg10: memref<128x128xbf16, #tpu.memory_space<vmem>>) attributes {dimension_semantics = [#tpu.dimension_semantics<parallel>], iteration_bounds = array<i64: 2>, scalar_prefetch = 0 : i64, scratch_operands = 0 : i64, tpu.core_type = #tpu.core_type<tc>, window_params = [{transform_indices = @transform_0, window_bounds = array<i64: 128, 16>}, {pipeline_mode = #tpu.pipeline_mode<synchronous>, transform_indices = @transform_1, window_bounds = array<i64: 16, 256>}, {pipeline_mode = #tpu.pipeline_mode<synchronous>, transform_indices = @transform_2, window_bounds = array<i64: 1, 256>}, {pipeline_mode = #tpu.pipeline_mode<synchronous>, transform_indices = @transform_3, window_bounds = array<i64: 256, 256>}, {pipeline_mode = #tpu.pipeline_mode<synchronous>, transform_indices = @transform_4, window_bounds = array<i64: 1, 256>}, {pipeline_mode = #tpu.pipeline_mode<synchronous>, transform_indices = @transform_5, window_bounds = array<i64: 256, 256>}, {pipeline_mode = #tpu.pipeline_mode<synchronous>, transform_indices = @transform_6, window_bounds = array<i64: 1, 256>}, {pipeline_mode = #tpu.pipeline_mode<synchronous>, transform_indices = @transform_7, window_bounds = array<i64: 256, 128>}, {pipeline_mode = #tpu.pipeline_mode<synchronous>, transform_indices = @transform_8, window_bounds = array<i64: 1, 128>}, {transform_indices = @transform_9, window_bounds = array<i64: 128, 128>}]} {
    %c0 = arith.constant 0 : index
    %c0_0 = arith.constant 0 : index
    %0 = vector.load %arg1[%c0, %c0_0] : memref<128x16xf32, #tpu.memory_space<vmem>>, vector<128x16xf32>
    %1 = arith.truncf %0 : vector<128x16xf32> to vector<128x16xbf16>
    %c0_1 = arith.constant 0 : index
    %c0_2 = arith.constant 0 : index
    %2 = vector.load %arg2[%c0_1, %c0_2] : memref<16x256xbf16, #tpu.memory_space<vmem>>, vector<16x256xbf16>
    %cst = arith.constant dense<0.000000e+00> : vector<128x256xf32>
    %3 = tpu.matmul %1, %2, %cst {dimension_numbers = #tpu.dot_dimension_numbers<[1], [0], [0], [1], [0, 0, 1, 1], [], []>} : vector<128x16xbf16>, vector<16x256xbf16>, vector<128x256xf32> -> vector<128x256xf32>
    %c0_3 = arith.constant 0 : index
    %c0_4 = arith.constant 0 : index
    %4 = vector.load %arg3[%c0_3, %c0_4] : memref<1x256xf32, #tpu.memory_space<vmem>>, vector<1x256xf32>
    %5 = vector.broadcast %4 : vector<1x256xf32> to vector<128x256xf32>
    %6 = arith.addf %3, %5 : vector<128x256xf32>
    %cst_5 = arith.constant 0.000000e+00 : f32
    %7 = vector.broadcast %cst_5 : f32 to vector<128x256xf32>
    %8 = arith.maximumf %6, %7 : vector<128x256xf32>
    %9 = arith.truncf %8 : vector<128x256xf32> to vector<128x256xbf16>
    %c0_6 = arith.constant 0 : index
    %c0_7 = arith.constant 0 : index
    %10 = vector.load %arg4[%c0_6, %c0_7] : memref<256x256xbf16, #tpu.memory_space<vmem>>, vector<256x256xbf16>
    %cst_8 = arith.constant dense<0.000000e+00> : vector<128x256xf32>
    %11 = tpu.matmul %9, %10, %cst_8 {dimension_numbers = #tpu.dot_dimension_numbers<[1], [0], [0], [1], [0, 0, 1, 1], [], []>} : vector<128x256xbf16>, vector<256x256xbf16>, vector<128x256xf32> -> vector<128x256xf32>
    %c0_9 = arith.constant 0 : index
    %c0_10 = arith.constant 0 : index
    %12 = vector.load %arg5[%c0_9, %c0_10] : memref<1x256xf32, #tpu.memory_space<vmem>>, vector<1x256xf32>
    %13 = vector.broadcast %12 : vector<1x256xf32> to vector<128x256xf32>
    %14 = arith.addf %11, %13 : vector<128x256xf32>
    %cst_11 = arith.constant 0.000000e+00 : f32
    %15 = vector.broadcast %cst_11 : f32 to vector<128x256xf32>
    %16 = arith.maximumf %14, %15 : vector<128x256xf32>
    %17 = arith.truncf %16 : vector<128x256xf32> to vector<128x256xbf16>
    %c0_12 = arith.constant 0 : index
    %c0_13 = arith.constant 0 : index
    %18 = vector.load %arg6[%c0_12, %c0_13] : memref<256x256xbf16, #tpu.memory_space<vmem>>, vector<256x256xbf16>
    %cst_14 = arith.constant dense<0.000000e+00> : vector<128x256xf32>
    %19 = tpu.matmul %17, %18, %cst_14 {dimension_numbers = #tpu.dot_dimension_numbers<[1], [0], [0], [1], [0, 0, 1, 1], [], []>} : vector<128x256xbf16>, vector<256x256xbf16>, vector<128x256xf32> -> vector<128x256xf32>
    %c0_15 = arith.constant 0 : index
    %c0_16 = arith.constant 0 : index
    %20 = vector.load %arg7[%c0_15, %c0_16] : memref<1x256xf32, #tpu.memory_space<vmem>>, vector<1x256xf32>
    %21 = vector.broadcast %20 : vector<1x256xf32> to vector<128x256xf32>
    %22 = arith.addf %19, %21 : vector<128x256xf32>
    %cst_17 = arith.constant 0.000000e+00 : f32
    %23 = vector.broadcast %cst_17 : f32 to vector<128x256xf32>
    %24 = arith.maximumf %22, %23 : vector<128x256xf32>
    %25 = arith.truncf %24 : vector<128x256xf32> to vector<128x256xbf16>
    %c0_18 = arith.constant 0 : index
    %c0_19 = arith.constant 0 : index
    %26 = vector.load %arg8[%c0_18, %c0_19] : memref<256x128xbf16, #tpu.memory_space<vmem>>, vector<256x128xbf16>
    %cst_20 = arith.constant dense<0.000000e+00> : vector<128x128xf32>
    %27 = tpu.matmul %25, %26, %cst_20 {dimension_numbers = #tpu.dot_dimension_numbers<[1], [0], [0], [1], [0, 0, 1, 1], [], []>} : vector<128x256xbf16>, vector<256x128xbf16>, vector<128x128xf32> -> vector<128x128xf32>
    %c0_21 = arith.constant 0 : index
    %c0_22 = arith.constant 0 : index
    %28 = vector.load %arg9[%c0_21, %c0_22] : memref<1x128xf32, #tpu.memory_space<vmem>>, vector<1x128xf32>
    %29 = vector.broadcast %28 : vector<1x128xf32> to vector<128x128xf32>
    %30 = arith.addf %27, %29 : vector<128x128xf32>
    %31 = arith.truncf %30 : vector<128x128xf32> to vector<128x128xbf16>
    %c0_23 = arith.constant 0 : index
    %c0_24 = arith.constant 0 : index
    %32 = vector.load %arg10[%c0_23, %c0_24] : memref<128x128xbf16, #tpu.memory_space<vmem>>, vector<128x128xbf16>
    tpu.vector_store %arg10[%c0_23, %c0_24], %31 {strides = array<i32>} : memref<128x128xbf16, #tpu.memory_space<vmem>>, vector<128x128xbf16>,
    return
  }
  func.func @transform_0(%arg0: i32) -> (i32, i32) {
    %c0_i32 = arith.constant 0 : i32
    %c0_i32_0 = arith.constant 0 : i32
    return %arg0, %c0_i32 : i32, i32
  }
  func.func @transform_1(%arg0: i32) -> (i32, i32) {
    %c0_i32 = arith.constant 0 : i32
    %c0_i32_0 = arith.constant 0 : i32
    %c0_i32_1 = arith.constant 0 : i32
    return %c0_i32, %c0_i32_0 : i32, i32
  }
  func.func @transform_2(%arg0: i32) -> (i32, i32) {
    %c0_i32 = arith.constant 0 : i32
    %c0_i32_0 = arith.constant 0 : i32
    %c0_i32_1 = arith.constant 0 : i32
    return %c0_i32, %c0_i32_0 : i32, i32
  }
  func.func @transform_3(%arg0: i32) -> (i32, i32) {
    %c0_i32 = arith.constant 0 : i32
    %c0_i32_0 = arith.constant 0 : i32
    %c0_i32_1 = arith.constant 0 : i32
    return %c0_i32, %c0_i32_0 : i32, i32
  }
  func.func @transform_4(%arg0: i32) -> (i32, i32) {
    %c0_i32 = arith.constant 0 : i32
    %c0_i32_0 = arith.constant 0 : i32
    %c0_i32_1 = arith.constant 0 : i32
    return %c0_i32, %c0_i32_0 : i32, i32
  }
  func.func @transform_5(%arg0: i32) -> (i32, i32) {
    %c0_i32 = arith.constant 0 : i32
    %c0_i32_0 = arith.constant 0 : i32
    %c0_i32_1 = arith.constant 0 : i32
    return %c0_i32, %c0_i32_0 : i32, i32
  }
  func.func @transform_6(%arg0: i32) -> (i32, i32) {
    %c0_i32 = arith.constant 0 : i32
    %c0_i32_0 = arith.constant 0 : i32
    %c0_i32_1 = arith.constant 0 : i32
    return %c0_i32, %c0_i32_0 : i32, i32
  }
  func.func @transform_7(%arg0: i32) -> (i32, i32) {
    %c0_i32 = arith.constant 0 : i32
    %c0_i32_0 = arith.constant 0 : i32
    %c0_i32_1 = arith.constant 0 : i32
    return %c0_i32, %c0_i32_0 : i32, i32
  }
  func.func @transform_8(%arg0: i32) -> (i32, i32) {
    %c0_i32 = arith.constant 0 : i32
    %c0_i32_0 = arith.constant 0 : i32
    %c0_i32_1 = arith.constant 0 : i32
    return %c0_i32, %c0_i32_0 : i32, i32
  }
  func.func @transform_9(%arg0: i32) -> (i32, i32) {
    %c0_i32 = arith.constant 0 : i32
    %c0_i32_0 = arith.constant 0 : i32
    return %arg0, %c0_i32 : i32, i32
  }
}

</mosaic_0001>

<bundles_post_ra>
// kernel: tpu_custom_call.1
= control target key start
LH: loop header
LB: loop body
LE: loop exit
PB: predicated region body
PF: predicated region fallthrough
CT: control target
= control target key end

     0   :  { %14 = vsyncpa [#allocation3], 0  ;;  %s2819_s0 = inlined_call_operand.vmem [shape: f32[256,16], index: 0, kind: input, shape index: {}]   ;;  %s2820_s1 = inlined_call_operand.vmem [shape: bf16[16,256], index: 1, kind: input, shape index: {}]   ;;  %s2821_s2 = inlined_call_operand.vmem [shape: f32[1,256], index: 2, kind: input, shape index: {}]   ;;  %s2822_s3 = inlined_call_operand.vmem [shape: bf16[256,256], index: 3, kind: input, shape index: {}]   ;;  %s2823_s4 = inlined_call_operand.vmem [shape: f32[1,256], index: 4, kind: input, shape index: {}]   ;;  %s2824_s5 = inlined_call_operand.hbm [shape: bf16[256,256], index: 5, kind: input, shape index: {}]   ;;  %s2825_s6 = inlined_call_operand.vmem [shape: f32[1,256], index: 6, kind: input, shape index: {}]   ;;  %s2826_s7 = inlined_call_operand.hbm [shape: bf16[256,128], index: 7, kind: input, shape index: {}]   ;;  %s2827_s8 = inlined_call_operand.vmem [shape: f32[1,128], index: 8, kind: input, shape index: {}]   ;;  %s2828_s9 = inlined_call_operand.hbm [shape: bf16[256,128], index: 9, kind: output, shape index: {}]  }
   0x1   :  { %15 = vsyncpa [#allocation6], 0 }
   0x2   :  { %16 = vsyncpa [#allocation4], 0 }
   0x3   :  { %18 = vsyncpa [#allocation4 + $0x1], 0  ;;  %s2370_s30 = smov 0   ;;  %s2372_s10 = smov 0  }
   0x4   :  { %s2374_s11 = smov 0   ;;  %s2376_s12 = smov 0  }
   0x5 LB: > { %s2391_s13 = sadd.s32 4294967295, %s2308_s12   ;;  %s1739_s14 = sadd.s32 4294967294, %s2308_s12   ;;  %s2308_s12 = sphi %s2376_s12, %s2844_s12   ;;  %s2304_s11 = sphi %s2374_s11, %s2843_s11   ;;  %s2300_s10 = sphi %s2372_s10, %s2842_s10   ;;  %s2296_s30 = sphi %s2370_s30, %s2841_s30  }
   0x6   : > { %s2395_s15 = sadd.s32 1, %s2308_s12   ;;  %s225_s16 = sadd.s32 1, %s2304_s11 }
   0x7   : > { %s222_s17 = ssub.s32 %s2308_s12, %s2395_s15  ;;  %p235_p0 = scmp.ne.s32.totalorder %s2304_s11, %s2300_s10 }
   0x8   : > { %p223_p1 = scmp.eq.s32.totalorder %s222_s17, 0  ;;  %p236_p2 = scmp.eq.s32.totalorder %s2391_s13, 1 }
   0x9   : > { %p241_p3 = scmp.ne.s32.totalorder %s2300_s10, %s2296_s30  ;;  %p242_p4 = scmp.eq.s32.totalorder %s1739_s14, 1 }
   0xa   : > { %s2406_s18 = scalar_select %p223_p1, %s2304_s11, %s225_s16  }
   0xb   : > { %p2408_p5 = por %p236_p2, %p235_p0  ;;  %p2412_p6 = por %p242_p4, %p241_p3 }
   0xc   : > { %2830 = sst [smem:[#allocation11_spill]] %s2406_s18  ;;  %p1740_p7 = scmp.ge.s32.totalorder %s2308_s12, 1 }
   0xd   : > { %s2832_s20 = scalar_select %p2412_p6, 1, 0 }
   0xe   : > { %p249_p8 = scmp.lt.s32.totalorder %s2308_s12, 3  ;;  %p2829_p9 = scmp.eq.s32.totalorder %s2391_s13, 0 }
   0xf   : > { %s2310_s22 = smov [#allocation2]   ;;  %s2311_s25 = smov [#allocation5]  }
  0x10   : > { %p2419_p10 = pnand %p1740_p7, %p249_p8  ;;  %s273_s23 = sshll.u32 %s2310_s22, 4  ;;  %s274_s23 = int_to_ptr.vmem [resolvable:$true] %s273_s23 }
  0x11   : > { %s289_s26 = sshll.u32 %s2311_s25, 4  ;;  %s2199_s27 = scalar_lea.vmem %s274_s23, 4096  ;;  %s290_s26 = int_to_ptr.vmem [resolvable:$true] %s289_s26 }
  0x12   : > { %p2016_p11 = pneg %p2419_p10  ;;  %p2200_p0 = scmp.ne.s32.totalorder %s274_s23, %s2199_s27 }
  0x13   : > { %p2207_p3 = scmp.lt.s32.totalorder %s274_s23, %s274_s23  ;;  %p2208_p4 = scmp.lt.s32.totalorder %s2199_s27, %s2199_s27 }
  0x14   : > { %p2427_p12 = pnand %p2829_p9, %p2016_p11 }
  0x15   : > { %p2209_p7 = por %p2208_p4, %p2207_p3 }
  0x16   : > { %p2190_p13 = pneg %p2427_p12 }
  0x18   : > { %p2202_p1 = pnand %p2200_p0, %p2190_p13 }
  0x1a   : > { %p2203_p2 = pneg %p2202_p1 }
  0x1c   : > { %p2210_p8 = pnand %p2209_p7, %p2203_p2 }
  0x1e   : > { %2213 = shalt.err (!%p2210_p8)
}
  0x1f   : > { %s2312_s28 = smov 128   ;;  %s2313_s29 = smov 8  }
  0x20   : > { %2019 = dma.hbm_to_vmem [thread:$0]  (!%p2427_p12), %s2824_s5, 4096, %s274_s23, [#allocation3], %s2312_s28, %s2312_s28, %s2313_s29  }
  0x21   : > { %s2225_s17 = scalar_lea.vmem %s290_s26, 2048  ;;  %p2233_p9 = scmp.lt.s32.totalorder %s290_s26, %s290_s26 }
  0x22   : > { %p2226_p11 = scmp.ne.s32.totalorder %s290_s26, %s2225_s17  ;;  %p2234_p6 = scmp.lt.s32.totalorder %s2225_s17, %s2225_s17 }
  0x24   : > { %p2228_p0 = pnand %p2226_p11, %p2190_p13  ;;  %p2235_p3 = por %p2234_p6, %p2233_p9 }
  0x26   : > { %p2229_p1 = pneg %p2228_p0 }
  0x28   : > { %p2236_p2 = pnand %p2235_p3, %p2229_p1 }
  0x2a   : > { %2239 = shalt.err (!%p2236_p2)
}
  0x2b   : > { %s2314_s22 = smov 64   ;;  %s2315_s25 = smov 4  }
  0x2c   : > { %2022 = dma.hbm_to_vmem [thread:$0]  (!%p2427_p12), %s2826_s7, 2048, %s290_s26, [#allocation6], %s2314_s22, %s2314_s22, %s2315_s25  }
  0x2d   : > { %317 = sbr.rel (%p2419_p10) target bundleno = 956 (0x3bc), region = 56  ;;  %p2835_p4 = scmp.eq.s32.totalorder (!%p2419_p10), %s2391_s13, 0 }
  0x32   : > { %2283 = dma.done.wait (%p2835_p4), [#allocation3], 4096   ;;  %p2836_p13 = pmov %p2835_p4 }
  0x33   : > { %p2837_p6 = pmov %p2835_p4 }
  0x34   : > { %2285 = vsyncadd (%p2836_p13), [#allocation3], 4294963200 }
  0x35   : > { %2287 = dma.done.wait (%p2837_p6), [#allocation6], 2048   ;;  %p2838_p9 = pmov %p2835_p4 }
  0x36   : > { %s1748_s23 = sshll.u32 %s2391_s13, 4  ;;  %v2316_v0 = vmov 0   ;;  %v2073_v1 = vld [vmem:[%s2820_s1 + $0x4] ss:$8 sps:$4 sm:$0xff]   ;;  %v2075_v2 = vld [vmem:[%s2820_s1] ss:$8 sps:$4 sm:$0xff]  }
  0x37   : > { %2289 = vsyncadd (%p2838_p9), [#allocation6], 4294965248  ;;  %470 = vmatprep.mubr.bf16.mxu0 %v2316_v0  ;;  %p358_p12 = scmp.lt.s32.totalorder %s1748_s23, 31  ;;  %452 = vmatprep.subr.bf16.mxu0 %v2073_v1  ;;  %vm413_vm0 = vcmask 130048   ;;  %v2076_v8 = vld [vmem:[%s2822_s3 + $0x74] ss:$8 sps:$4 sm:$0xff]  }
  0x38   : > { %453 = vmatpush1.bf16.msra.mxu0 %v2075_v2  ;;  %v2078_v9 = vld [vmem:[%s2822_s3 + $0x70] ss:$8 sps:$4 sm:$0xff]   ;;  %v2079_v10 = vld [vmem:[%s2822_s3 + $0x64] ss:$8 sps:$4 sm:$0xff]   ;;  %803 = vmatprep.subr.bf16.mxu1 %v2076_v8  ;;  %v2081_v12 = vld [vmem:[%s2822_s3 + $0x60] ss:$8 sps:$4 sm:$0xff]  }
  0x39   : > { %s2846_s23 = smov (!%p358_p12, %s1748_s23), 31  ;;  %804 = vmatpush1.bf16.msra.mxu1 %v2078_v9  ;;  %v2082_v13 = vld [vmem:[%s2822_s3 + $0x54] ss:$8 sps:$4 sm:$0xff]   ;;  %v2084_v15 = vld [vmem:[%s2822_s3 + $0x50] ss:$8 sps:$4 sm:$0xff]   ;;  %s354_s29 = sand.u32 1, %s2300_s10  }
  0x3a   : > { %s1749_s18 = sshll.u32 %s2846_s23, 3  ;;  %805 = vmatprep.subr.bf16.mxu1 %v2079_v10  ;;  %v2085_v17 = vld [vmem:[%s2822_s3 + $0x44] ss:$8 sps:$4 sm:$0xff]   ;;  %v2087_v19 = vld [vmem:[%s2822_s3 + $0x40] ss:$8 sps:$4 sm:$0xff]   ;;  %s1747_s16 = sshll.u32 %s354_s29, 6 }
  0x3b   : > { %s2464_s26 = scalar_lea.vmem %s2819_s0, %s1749_s18  ;;  %v2088_v20 = vld [vmem:[%s2822_s3 + $0x34] ss:$8 sps:$4 sm:$0xff]   ;;  %v2090_v22 = vld [vmem:[%s2822_s3 + $0x30] ss:$8 sps:$4 sm:$0xff]   ;;  %v2091_v24 = vld [vmem:[%s2822_s3 + $0x24] ss:$8 sps:$4 sm:$0xff]  }
  0x3c   : > { %v365_v3 = vld [vmem:[%s2464_s26] sm:$0xff]  ;;  %v366_v4 = vld [vmem:[%s2464_s26 + $0x8] sm:$0xff]  ;;  %v367_v6 = vld [vmem:[%s2464_s26 + $0x10] sm:$0xff]  ;;  %s2744_s17 = scalar_lea.vmem [#allocation7], %s1747_s16  ;;  %s1878_s22 = sshll.u32 %s2391_s13, 10 }
  0x3d   : > { %v381_v5 = vpack.c.bf16 %v366_v4, %v365_v3  ;;  %v368_v7 = vld [vmem:[%s2464_s26 + $0x18] sm:$0xff]  ;;  %v369_v14 = vld [vmem:[%s2464_s26 + $0x20] sm:$0xff]  ;;  %806 = vmatpush1.bf16.msra.mxu1 %v2081_v12  ;;  %v370_v16 = vld [vmem:[%s2464_s26 + $0x28] sm:$0xff]  ;;  %s1655_s25 = sshll.u32 %s2744_s17, 4  ;;  %s2772_s18 = scalar_lea.hbm %s2828_s9, %s1878_s22  ;;  %s2774_s25 = int_to_ptr.vmem [resolvable:$true] %s1655_s25 }
  0x3e   : > { %v382_v11 = vpack.c.bf16 %v368_v7, %v367_v6  ;;  %807 = vmatprep.subr.bf16.mxu1 %v2082_v13  ;;  %v383_v18 = vpack.c.bf16 %v370_v16, %v369_v14  ;;  %v371_v21 = vld [vmem:[%s2464_s26 + $0x30] sm:$0xff]  ;;  %v372_v23 = vld [vmem:[%s2464_s26 + $0x38] sm:$0xff]  ;;  %v2093_v25 = vld [vmem:[%s2822_s3 + $0x20] ss:$8 sps:$4 sm:$0xff]   ;;  %s2779_s21 = scalar_lea.sflag [#allocation4], %s354_s29  ;;  %s2240_s13 = scalar_lea.vmem %s2774_s25, 1024 }
  0x3f   : > { %1752 = vmatmul.mubr.msk.bf16.vlgmr.msra.gmra.mxu0 %vm413_vm0, %v381_v5  ;;  %v2094_v26 = vld [vmem:[%s2822_s3 + $0x14] ss:$8 sps:$4 sm:$0xff]   ;;  %v384_v27 = vpack.c.bf16 %v372_v23, %v371_v21  ;;  %v2096_v28 = vld [vmem:[%s2822_s3 + $0x10] ss:$8 sps:$4 sm:$0xff]   ;;  %v373_v29 = vld [vmem:[%s2464_s26 + $0x40] sm:$0xff]  ;;  %v393_v21 = vlaneseq  ;;  %p2241_p10 = scmp.ne.s32.totalorder %s2774_s25, %s2240_s13  ;;  %s2317_s24 = smov [#allocation7]  }
  0x40   : > { %480 = vmatprep.mubr.bf16.mxu0 %v2316_v0  ;;  %v374_v30 = vld [vmem:[%s2464_s26 + $0x48] sm:$0xff]  ;;  %v2100_v33 = vld [vmem:[%s2822_s3 + $0xf4] ss:$8 sps:$4 sm:$0xff]   ;;  %v2102_v35 = vld [vmem:[%s2822_s3 + $0xf0] ss:$8 sps:$4 sm:$0xff]   ;;  %s2244_s28 = sshll.u32 %s2317_s24, 4  ;;  %s2245_s28 = int_to_ptr.vmem [resolvable:$false] %s2244_s28 }
  0x41   : > { %808 = vmatpush1.bf16.msra.mxu1 %v2084_v15  ;;  %v2097_v31 = vld [vmem:[%s2822_s3 + $0x4] ss:$8 sps:$4 sm:$0xff]   ;;  %v2099_v32 = vld [vmem:[%s2822_s3] ss:$8 sps:$4 sm:$0xff]   ;;  %v385_v34 = vpack.c.bf16 %v374_v30, %v373_v29  ;;  %v375_v36 = vld [vmem:[%s2464_s26 + $0x50] sm:$0xff]  ;;  %p2242_p7 = pnand %p2241_p10, %p2408_p5  ;;  %p2247_p11 = scmp.lt.s32.totalorder %s2774_s25, %s2245_s28 }
  0x42   : > { %809 = vmatprep.subr.bf16.mxu1 %v2085_v17  ;;  %v376_v37 = vld [vmem:[%s2464_s26 + $0x58] sm:$0xff]  ;;  %v2103_v38 = vld [vmem:[%s2822_s3 + $0xe4] ss:$8 sps:$4 sm:$0xff]   ;;  %v2105_v39 = vld [vmem:[%s2822_s3 + $0xe0] ss:$8 sps:$4 sm:$0xff]  }
  0x43   : > { %v2106_v40 = vld [vmem:[%s2822_s3 + $0xd4] ss:$8 sps:$4 sm:$0xff]   ;;  %v386_v41 = vpack.c.bf16 %v376_v37, %v375_v36  ;;  %v2108_v42 = vld [vmem:[%s2822_s3 + $0xd0] ss:$8 sps:$4 sm:$0xff]   ;;  %v377_v43 = vld [vmem:[%s2464_s26 + $0x60] sm:$0xff]  ;;  %p2243_p8 = pneg %p2242_p7 }
  0x44   : > { %v378_v44 = vld [vmem:[%s2464_s26 + $0x68] sm:$0xff]  ;;  %v2112_v48 = vld [vmem:[%s2822_s3 + $0xb4] ss:$8 sps:$4 sm:$0xff]   ;;  %v2114_v49 = vld [vmem:[%s2822_s3 + $0xb0] ss:$8 sps:$4 sm:$0xff]  }
  0x45   : > { %810 = vmatpush1.bf16.msra.mxu1 %v2087_v19  ;;  %v2109_v45 = vld [vmem:[%s2822_s3 + $0xc4] ss:$8 sps:$4 sm:$0xff]   ;;  %v387_v46 = vpack.c.bf16 %v378_v44, %v377_v43  ;;  %v2111_v47 = vld [vmem:[%s2822_s3 + $0xc0] ss:$8 sps:$4 sm:$0xff]   ;;  %v379_v50 = vld [vmem:[%s2464_s26 + $0x70] sm:$0xff] }
  0x46   : > { %811 = vmatprep.subr.bf16.mxu1 %v2088_v20  ;;  %v380_v51 = vld [vmem:[%s2464_s26 + $0x78] sm:$0xff]  ;;  %v2115_v53 = vld [vmem:[%s2822_s3 + $0xa4] ss:$8 sps:$4 sm:$0xff]   ;;  %v2117_v54 = vld [vmem:[%s2822_s3 + $0xa0] ss:$8 sps:$4 sm:$0xff]   ;;  %s2246_s26 = scalar_lea.vmem %s2245_s28, 2048 }
  0x47   : > { %1753 = vmatmul.mubr.msk.bf16.gmra.mxu0 %vm413_vm0, %v382_v11  ;;  %v388_v52 = vpack.c.bf16 %v380_v51, %v379_v50  ;;  %v2118_v55 = vld [vmem:[%s2822_s3 + $0x94] ss:$8 sps:$4 sm:$0xff]   ;;  %v2120_v56 = vld [vmem:[%s2822_s3 + $0x90] ss:$8 sps:$4 sm:$0xff]   ;;  %v2121_v57 = vld [vmem:[%s2822_s3 + $0x84] ss:$8 sps:$4 sm:$0xff]   ;;  %p2248_p0 = scmp.lt.s32.totalorder %s2246_s26, %s2240_s13 }
  0x48   : > { %490 = vmatprep.mubr.bf16.mxu0 %v2316_v0  ;;  %v2123_v58 = vld [vmem:[%s2822_s3 + $0x80] ss:$8 sps:$4 sm:$0xff]   ;;  %v2124_v59 = vld [vmem:[#allocation2 + $0x70] ss:$8 sps:$4 sm:$0xff]   ;;  %v2126_v60 = vld [vmem:[#allocation2 + $0x74] ss:$8 sps:$4 sm:$0xff]  }
  0x49   : > { %812 = vmatpush1.bf16.msra.mxu1 %v2090_v22  ;;  %v2129_v61 = vld [vmem:[#allocation2 + $0x64] ss:$8 sps:$4 sm:$0xff]   ;;  %1168 = vmatprep.subr.bf16.mxu0 %v2126_v60  ;;  %v2127_v62 = vld [vmem:[#allocation2 + $0x60] ss:$8 sps:$4 sm:$0xff]   ;;  %v2132_v63 = vld [vmem:[#allocation2 + $0x54] ss:$8 sps:$4 sm:$0xff]   ;;  %p2249_p1 = por %p2248_p0, %p2247_p11 }
  0x4a   : > { %813 = vmatprep.subr.bf16.mxu1 %v2091_v24  ;;  %1169 = vmatpush1.bf16.msra.mxu0 %v2124_v59  ;;  %v2135_v1 = vld [vmem:[#allocation2 + $0x44] ss:$8 sps:$4 sm:$0xff]   ;;  %v2133_v2 = vld [vmem:[#allocation2 + $0x40] ss:$8 sps:$4 sm:$0xff]   ;;  %v2138_v3 = vld [vmem:[#allocation2 + $0x34] ss:$8 sps:$4 sm:$0xff]  }
  0x4b   : > { %1170 = vmatprep.subr.bf16.mxu0 %v2129_v61  ;;  %v2136_v4 = vld [vmem:[#allocation2 + $0x30] ss:$8 sps:$4 sm:$0xff]   ;;  %v2141_v5 = vld [vmem:[#allocation2 + $0x24] ss:$8 sps:$4 sm:$0xff]   ;;  %v2139_v6 = vld [vmem:[#allocation2 + $0x20] ss:$8 sps:$4 sm:$0xff]   ;;  %p2250_p3 = pnand %p2249_p1, %p2243_p8 }
  0x4c   : > { %v2144_v7 = vld [vmem:[#allocation2 + $0x14] ss:$8 sps:$4 sm:$0xff]   ;;  %v2142_v8 = vld [vmem:[#allocation2 + $0x10] ss:$8 sps:$4 sm:$0xff]   ;;  %v2147_v9 = vld [vmem:[#allocation2 + $0x4] ss:$8 sps:$4 sm:$0xff]  }
  0x4d   : > { %814 = vmatpush1.bf16.msra.mxu1 %v2093_v25  ;;  %v2145_v10 = vld [vmem:[#allocation2] ss:$8 sps:$4 sm:$0xff]   ;;  %v2150_v11 = vld [vmem:[#allocation2 + $0xf4] ss:$8 sps:$4 sm:$0xff]   ;;  %v2148_v12 = vld [vmem:[#allocation2 + $0xf0] ss:$8 sps:$4 sm:$0xff]  }
  0x4e   : > { %815 = vmatprep.subr.bf16.mxu1 %v2094_v26  ;;  %1171 = vmatpush1.bf16.msra.mxu0 %v2127_v62  ;;  %v2153_v13 = vld [vmem:[#allocation2 + $0xe4] ss:$8 sps:$4 sm:$0xff]   ;;  %v2151_v14 = vld [vmem:[#allocation2 + $0xe0] ss:$8 sps:$4 sm:$0xff]   ;;  %v2156_v15 = vld [vmem:[#allocation2 + $0xd4] ss:$8 sps:$4 sm:$0xff]  }
  0x4f   : > { %1754 = vmatmul.mubr.msk.bf16.gmra.mxu0 %vm413_vm0, %v383_v18  ;;  %1172 = vmatprep.subr.bf16.mxu0 %v2132_v63  ;;  %v2154_v16 = vld [vmem:[#allocation2 + $0xd0] ss:$8 sps:$4 sm:$0xff]   ;;  %v2159_v17 = vld [vmem:[#allocation2 + $0xc4] ss:$8 sps:$4 sm:$0xff]   ;;  %v2157_v18 = vld [vmem:[#allocation2 + $0xc0] ss:$8 sps:$4 sm:$0xff]  }
  0x50   : > { %500 = vmatprep.mubr.bf16.mxu0 %v2316_v0  ;;  %v2162_v19 = vld [vmem:[#allocation2 + $0xb4] ss:$8 sps:$4 sm:$0xff]   ;;  %v2160_v20 = vld [vmem:[#allocation2 + $0xb0] ss:$8 sps:$4 sm:$0xff]   ;;  %v394_v22 = vshrl.u32 %v393_v21, 7 }
  0x51   : > { %816 = vmatpush1.bf16.msra.mxu1 %v2096_v28  ;;  %v391_v25 = vld [vmem:[%s2821_s2] sm:$0x3] }
  0x52   : > { %817 = vmatprep.subr.bf16.mxu1 %v2097_v31  ;;  %v2599_v23 = vsub.s32 1, %v394_v22  ;;  %v2601_v24 = vsub.s32 0, %v394_v22 }
  0x54   : > { %v2610_v28 = vrot.slane %v391_v25, %v2601_v24 }
  0x55   : > { %818 = vmatpush1.bf16.msra.mxu1 %v2099_v32 }
  0x56   : > { %819 = vmatprep.subr.bf16.mxu1 %v2100_v33 }
  0x57   : > { %1755 = vmatmul.mubr.msk.bf16.gmra.mxu0 %vm413_vm0, %v384_v27  ;;  %v2607_v27 = vrot.slane %v391_v25, %v2599_v23 }
  0x58   : > { %510 = vmatprep.mubr.bf16.mxu0 %v2316_v0 }
  0x59   : > { %820 = vmatpush2.bf16.msra.mxu1 %v2102_v35 }
  0x5a   : > { %821 = vmatprep.subr.bf16.mxu1 %v2103_v38 }
  0x5d   : > { %822 = vmatpush2.bf16.msra.mxu1 %v2105_v39 }
  0x5e   : > { %823 = vmatprep.subr.bf16.mxu1 %v2106_v40 }
  0x5f   : > { %1756 = vmatmul.mubr.msk.bf16.gmra.mxu0 %vm413_vm0, %v385_v34 }
  0x60   : > { %520 = vmatprep.mubr.bf16.mxu0 %v2316_v0 }
  0x61   : > { %824 = vmatpush2.bf16.msra.mxu1 %v2108_v42 }
  0x62   : > { %825 = vmatprep.subr.bf16.mxu1 %v2109_v45 }
  0x65   : > { %826 = vmatpush2.bf16.msra.mxu1 %v2111_v47 }
  0x66   : > { %827 = vmatprep.subr.bf16.mxu1 %v2112_v48 }
  0x67   : > { %1757 = vmatmul.mubr.msk.bf16.gmra.mxu0 %vm413_vm0, %v386_v41 }
  0x68   : > { %530 = vmatprep.mubr.bf16.mxu0 %v2316_v0 }
  0x69   : > { %828 = vmatpush2.bf16.msra.mxu1 %v2114_v49 }
  0x6a   : > { %829 = vmatprep.subr.bf16.mxu1 %v2115_v53 }
  0x6d   : > { %830 = vmatpush2.bf16.msra.mxu1 %v2117_v54 }
  0x6e   : > { %831 = vmatprep.subr.bf16.mxu1 %v2118_v55 }
  0x6f   : > { %1758 = vmatmul.mubr.msk.bf16.gmra.mxu0 %vm413_vm0, %v387_v46 }
  0x70   : > { %540 = vmatprep.mubr.bf16.mxu0 %v2316_v0  ;;  %v2130_v0 = vld [vmem:[#allocation2 + $0x50] ss:$8 sps:$4 sm:$0xff]  }
  0x71   : > { %832 = vmatpush2.bf16.msra.mxu1 %v2120_v56  ;;  %1173 = vmatpush1.bf16.msra.mxu0 %v2130_v0 }
  0x72   : > { %833 = vmatprep.subr.bf16.mxu1 %v2121_v57  ;;  %1174 = vmatprep.subr.bf16.mxu0 %v2135_v1 }
  0x75   : > { %834 = vmatpush2.bf16.msra.mxu1 %v2123_v58  ;;  %1175 = vmatpush1.bf16.msra.mxu0 %v2133_v2 }
  0x76   : > { %1176 = vmatprep.subr.bf16.mxu0 %v2138_v3 }
  0x77   : > { %1759 = vmatmul.mubr.msk.bf16.gmra.mxu0 %vm413_vm0, %v388_v52 }
  0x79   : > { %1177 = vmatpush1.bf16.msra.mxu0 %v2136_v4 }
  0x7a   : > { %1178 = vmatprep.subr.bf16.mxu0 %v2141_v5 }
  0x7d   : > { %1179 = vmatpush1.bf16.msra.mxu0 %v2139_v6 }
  0x7e   : > { %1180 = vmatprep.subr.bf16.mxu0 %v2144_v7 }
  0x81   : > { %1181 = vmatpush1.bf16.msra.mxu0 %v2142_v8 }
  0x82   : > { %1182 = vmatprep.subr.bf16.mxu0 %v2147_v9 }
  0x85   : > { %1183 = vmatpush1.bf16.msra.mxu0 %v2145_v10 }
  0x86   : > { %1184 = vmatprep.subr.bf16.mxu0 %v2150_v11 }
  0x89   : > { %1185 = vmatpush2.bf16.msra.mxu0 %v2148_v12 }
  0x8a   : > { %1186 = vmatprep.subr.bf16.mxu0 %v2153_v13 }
  0x8d   : > { %1187 = vmatpush2.bf16.msra.mxu0 %v2151_v14 }
  0x8e   : > { %1188 = vmatprep.subr.bf16.mxu0 %v2156_v15 }
  0x91   : > { %1189 = vmatpush2.bf16.msra.mxu0 %v2154_v16 }
  0x92   : > { %1190 = vmatprep.subr.bf16.mxu0 %v2159_v17 }
  0x95   : > { %1191 = vmatpush2.bf16.msra.mxu0 %v2157_v18 }
  0x96   : > { %1192 = vmatprep.subr.bf16.mxu0 %v2162_v19 }
  0x99   : > { %1193 = vmatpush2.bf16.msra.mxu0 %v2160_v20 }
  0xff   : > { %v472_v26 = vpop.f32.mrf.mxu0 }
 0x100   : > { %v473_v33 = vadd.f32 %v472_v26, %v2610_v28 }
 0x101   : > { %v474_v29 = vpop.f32.mrf.mxu0 }
 0x102   : > { %v475_v31 = vadd.f32 %v474_v29, %v2607_v27  ;;  %v551_v40 = vmax.f32 %v473_v33, 0.0 }
 0x103   : > { %v476_v30 = vpop.f32.mrf.mxu0 }
 0x104   : > { %v477_v32 = vadd.f32 %v476_v30, %v2610_v28  ;;  %v552_v38 = vmax.f32 %v475_v31, 0.0 }
 0x105   : > { %v478_v34 = vpop.f32.mrf.mxu0 }
 0x106   : > { %v479_v35 = vadd.f32 %v478_v34, %v2607_v27  ;;  %v553_v36 = vmax.f32 %v477_v32, 0.0 }
 0x107   : > { %v482_v37 = vpop.f32.mrf.mxu0 }
 0x108   : > { %v554_v39 = vmax.f32 %v479_v35, 0.0  ;;  %v583_v43 = vpack.c.bf16 %v553_v36, %v551_v40  ;;  %v483_v47 = vadd.f32 %v482_v37, %v2610_v28 }
 0x109   : > { %v484_v41 = vpop.f32.mrf.mxu0 }
 0x10a   : > { %v584_v42 = vpack.c.bf16 %v554_v39, %v552_v38  ;;  %v485_v45 = vadd.f32 %v484_v41, %v2607_v27  ;;  %v555_v54 = vmax.f32 %v483_v47, 0.0 }
 0x10b   : > { %v486_v44 = vpop.f32.mrf.mxu0 }
 0x10c   : > { %v487_v46 = vadd.f32 %v486_v44, %v2610_v28  ;;  %835 = vmatprep.mubr.bf16.mxu1 %v584_v42  ;;  %v556_v52 = vmax.f32 %v485_v45, 0.0 }
 0x10d   : > { %v488_v48 = vpop.f32.mrf.mxu0  ;;  %836 = vmatmul.mubr.bf16.vlgmr.msra.gmra.mxu1 %v583_v43 }
 0x10e   : > { %v489_v49 = vadd.f32 %v488_v48, %v2607_v27  ;;  %v557_v50 = vmax.f32 %v487_v46, 0.0 }
 0x10f   : > { %v492_v51 = vpop.f32.mrf.mxu0 }
 0x110   : > { %v558_v53 = vmax.f32 %v489_v49, 0.0  ;;  %v585_v57 = vpack.c.bf16 %v557_v50, %v555_v54  ;;  %v493_v61 = vadd.f32 %v492_v51, %v2610_v28 }
 0x111   : > { %v494_v55 = vpop.f32.mrf.mxu0 }
 0x112   : > { %v586_v56 = vpack.c.bf16 %v558_v53, %v556_v52  ;;  %v495_v59 = vadd.f32 %v494_v55, %v2607_v27  ;;  %v559_v4 = vmax.f32 %v493_v61, 0.0 }
 0x113   : > { %v496_v58 = vpop.f32.mrf.mxu0 }
 0x114   : > { %v497_v60 = vadd.f32 %v496_v58, %v2610_v28  ;;  %845 = vmatprep.mubr.bf16.mxu1 %v586_v56  ;;  %v560_v2 = vmax.f32 %v495_v59, 0.0 }
 0x115   : > { %v498_v62 = vpop.f32.mrf.mxu0  ;;  %846 = vmatmul.mubr.bf16.gmra.mxu1 %v585_v57 }
 0x116   : > { %v499_v63 = vadd.f32 %v498_v62, %v2607_v27  ;;  %v561_v0 = vmax.f32 %v497_v60, 0.0 }
 0x117   : > { %v502_v1 = vpop.f32.mrf.mxu0 }
 0x118   : > { %v562_v3 = vmax.f32 %v499_v63, 0.0  ;;  %v587_v7 = vpack.c.bf16 %v561_v0, %v559_v4  ;;  %v503_v11 = vadd.f32 %v502_v1, %v2610_v28 }
 0x119   : > { %v504_v5 = vpop.f32.mrf.mxu0 }
 0x11a   : > { %v588_v6 = vpack.c.bf16 %v562_v3, %v560_v2  ;;  %v505_v9 = vadd.f32 %v504_v5, %v2607_v27  ;;  %v563_v18 = vmax.f32 %v503_v11, 0.0 }
 0x11b   : > { %v506_v8 = vpop.f32.mrf.mxu0 }
 0x11c   : > { %v507_v10 = vadd.f32 %v506_v8, %v2610_v28  ;;  %855 = vmatprep.mubr.bf16.mxu1 %v588_v6  ;;  %v564_v16 = vmax.f32 %v505_v9, 0.0 }
 0x11d   : > { %v508_v12 = vpop.f32.mrf.mxu0  ;;  %856 = vmatmul.mubr.bf16.gmra.mxu1 %v587_v7 }
 0x11e   : > { %v509_v13 = vadd.f32 %v508_v12, %v2607_v27  ;;  %v565_v14 = vmax.f32 %v507_v10, 0.0 }
 0x11f   : > { %v512_v15 = vpop.f32.mrf.mxu0 }
 0x120   : > { %v566_v17 = vmax.f32 %v509_v13, 0.0  ;;  %v589_v21 = vpack.c.bf16 %v565_v14, %v563_v18  ;;  %v513_v29 = vadd.f32 %v512_v15, %v2610_v28  ;;  %v2168_v18 = vld [vmem:[#allocation2 + $0x94] ss:$8 sps:$4 sm:$0xff]  }
 0x121   : > { %v514_v19 = vpop.f32.mrf.mxu0 }
 0x122   : > { %v590_v20 = vpack.c.bf16 %v566_v17, %v564_v16  ;;  %v515_v25 = vadd.f32 %v514_v19, %v2607_v27  ;;  %v567_v36 = vmax.f32 %v513_v29, 0.0  ;;  %v2165_v16 = vld [vmem:[#allocation2 + $0xa4] ss:$8 sps:$4 sm:$0xff]   ;;  %v2163_v17 = vld [vmem:[#allocation2 + $0xa0] ss:$8 sps:$4 sm:$0xff]  }
 0x123   : > { %v516_v22 = vpop.f32.mrf.mxu0  ;;  %1194 = vmatprep.subr.bf16.mxu0 %v2165_v16  ;;  %v2166_v19 = vld [vmem:[#allocation2 + $0x90] ss:$8 sps:$4 sm:$0xff]   ;;  %v2177_v29 = vld [vmem:[#allocation5 + $0x28] sm:$0xff]  }
 0x124   : > { %v517_v26 = vadd.f32 %v516_v22, %v2610_v28  ;;  %865 = vmatprep.mubr.bf16.mxu1 %v590_v20  ;;  %v568_v34 = vmax.f32 %v515_v25, 0.0  ;;  %1195 = vmatpush2.bf16.msra.mxu0 %v2163_v17  ;;  %v2169_v20 = vld [vmem:[#allocation2 + $0x80] ss:$8 sps:$4 sm:$0xff]   ;;  %v2174_v22 = vld [vmem:[#allocation5 + $0x70] sm:$0xff]  }
 0x125   : > { %v518_v30 = vpop.f32.mrf.mxu0  ;;  %866 = vmatmul.mubr.bf16.gmra.mxu1 %v589_v21  ;;  %1196 = vmatprep.subr.bf16.mxu0 %v2168_v18  ;;  %v2173_v21 = vld [vmem:[#allocation5 + $0x38] sm:$0xff]   ;;  %v2175_v25 = vld [vmem:[#allocation5 + $0x30] sm:$0xff]  }
 0x126   : > { %v519_v31 = vadd.f32 %v518_v30, %v2607_v27  ;;  %v569_v32 = vmax.f32 %v517_v26, 0.0  ;;  %v2176_v26 = vld [vmem:[#allocation5 + $0x68] sm:$0xff]   ;;  %v2178_v30 = vld [vmem:[#allocation5 + $0x60] sm:$0xff]  }
 0x127   : > { %v522_v33 = vpop.f32.mrf.mxu0 }
 0x128   : > { %v570_v35 = vmax.f32 %v519_v31, 0.0  ;;  %v591_v39 = vpack.c.bf16 %v569_v32, %v567_v36  ;;  %v523_v43 = vadd.f32 %v522_v33, %v2610_v28  ;;  %1197 = vmatpush2.bf16.msra.mxu0 %v2166_v19  ;;  %v2179_v31 = vld [vmem:[#allocation5 + $0x20] sm:$0xff]   ;;  %v2644_v32 = vld [vmem:[#allocation5 + $0x58] sm:$0xff]  }
 0x129   : > { %v524_v37 = vpop.f32.mrf.mxu0  ;;  %v2647_v33 = vld [vmem:[#allocation5 + $0x18] sm:$0xff]  }
 0x12a   : > { %v592_v38 = vpack.c.bf16 %v570_v35, %v568_v34  ;;  %v525_v41 = vadd.f32 %v524_v37, %v2607_v27  ;;  %v571_v50 = vmax.f32 %v523_v43, 0.0  ;;  %v631_v34 = vld [vmem:[%s2823_s4] sm:$0x3] }
 0x12b   : > { %v526_v40 = vpop.f32.mrf.mxu0  ;;  %v2654_v36 = vrot.slane %v631_v34, %v2599_v23  ;;  %v2657_v37 = vrot.slane %v631_v34, %v2601_v24 }
 0x12c   : > { %v527_v42 = vadd.f32 %v526_v40, %v2610_v28  ;;  %875 = vmatprep.mubr.bf16.mxu1 %v592_v38  ;;  %v572_v48 = vmax.f32 %v525_v41, 0.0 }
 0x12d   : > { %v528_v44 = vpop.f32.mrf.mxu0  ;;  %876 = vmatmul.mubr.bf16.gmra.mxu1 %v591_v39 }
 0x12e   : > { %v529_v45 = vadd.f32 %v528_v44, %v2607_v27  ;;  %v573_v46 = vmax.f32 %v527_v42, 0.0 }
 0x12f   : > { %v532_v47 = vpop.f32.mrf.mxu0 }
 0x130   : > { %v574_v49 = vmax.f32 %v529_v45, 0.0  ;;  %v593_v53 = vpack.c.bf16 %v573_v46, %v571_v50  ;;  %v533_v57 = vadd.f32 %v532_v47, %v2610_v28 }
 0x131   : > { %v534_v51 = vpop.f32.mrf.mxu0 }
 0x132   : > { %v594_v52 = vpack.c.bf16 %v574_v49, %v572_v48  ;;  %v535_v55 = vadd.f32 %v534_v51, %v2607_v27  ;;  %v575_v0 = vmax.f32 %v533_v57, 0.0 }
 0x133   : > { %v536_v54 = vpop.f32.mrf.mxu0 }
 0x134   : > { %v537_v56 = vadd.f32 %v536_v54, %v2610_v28  ;;  %885 = vmatprep.mubr.bf16.mxu1 %v594_v52  ;;  %v576_v62 = vmax.f32 %v535_v55, 0.0 }
 0x135   : > { %v538_v58 = vpop.f32.mrf.mxu0  ;;  %886 = vmatmul.mubr.bf16.gmra.mxu1 %v593_v53 }
 0x136   : > { %v539_v59 = vadd.f32 %v538_v58, %v2607_v27  ;;  %v577_v60 = vmax.f32 %v537_v56, 0.0 }
 0x137   : > { %v542_v61 = vpop.f32.mrf.mxu0 }
 0x138   : > { %v578_v63 = vmax.f32 %v539_v59, 0.0  ;;  %v595_v3 = vpack.c.bf16 %v577_v60, %v575_v0  ;;  %v543_v7 = vadd.f32 %v542_v61, %v2610_v28 }
 0x139   : > { %v544_v1 = vpop.f32.mrf.mxu0 }
 0x13a   : > { %v596_v2 = vpack.c.bf16 %v578_v63, %v576_v62  ;;  %v545_v5 = vadd.f32 %v544_v1, %v2607_v27  ;;  %v579_v13 = vmax.f32 %v543_v7, 0.0 }
 0x13b   : > { %v546_v4 = vpop.f32.mrf.mxu0 }
 0x13c   : > { %v547_v6 = vadd.f32 %v546_v4, %v2610_v28  ;;  %895 = vmatprep.mubr.bf16.mxu1 %v596_v2  ;;  %v580_v11 = vmax.f32 %v545_v5, 0.0  ;;  %v2171_v28 = vld [vmem:[#allocation2 + $0x84] ss:$8 sps:$4 sm:$0xff]  }
 0x13d   : > { %v548_v8 = vpop.f32.mrf.mxu0  ;;  %896 = vmatmul.mubr.bf16.gmra.mxu1 %v595_v3  ;;  %1198 = vmatprep.subr.bf16.mxu0 %v2171_v28 }
 0x13e   : > { %v549_v9 = vadd.f32 %v548_v8, %v2607_v27  ;;  %v581_v10 = vmax.f32 %v547_v6, 0.0  ;;  %1199 = vmatpush2.bf16.msra.mxu0 %v2169_v20  ;;  %v2172_v27 = vld [vmem:[#allocation5 + $0x78] sm:$0xff]  }
 0x13f   : > { %1990 = vmatprep.subr.bf16.mxu1 %v2172_v27  ;;  %1926 = vmatprep.subr.bf16.mxu0 %v2172_v27 }
 0x140   : > { %v582_v12 = vmax.f32 %v549_v9, 0.0  ;;  %v597_v15 = vpack.c.bf16 %v581_v10, %v579_v13  ;;  %1998 = vmatpush3.bf16.msra.mxu1 %v2173_v21 }
 0x141   : > { %1991 = vmatprep.subr.bf16.mxu1 %v2174_v22 }
 0x142   : > { %v598_v14 = vpack.c.bf16 %v582_v12, %v580_v11 }
 0x144   : > { %905 = vmatprep.mubr.bf16.mxu1 %v598_v14  ;;  %1999 = vmatpush3.bf16.msra.mxu1 %v2175_v25 }
 0x145   : > { %906 = vmatmul.mubr.bf16.gmra.mxu1 %v597_v15  ;;  %1992 = vmatprep.subr.bf16.mxu1 %v2176_v26 }
 0x148   : > { %2000 = vmatpush3.bf16.msra.mxu1 %v2177_v29 }
 0x149   : > { %1993 = vmatprep.subr.bf16.mxu1 %v2178_v30 }
 0x14c   : > { %2001 = vmatpush3.bf16.msra.mxu1 %v2179_v31 }
 0x14d   : > { %1994 = vmatprep.subr.bf16.mxu1 %v2644_v32 }
 0x150   : > { %2002 = vmatpush3.bf16.msra.mxu1 %v2647_v33 }
 0x1cd   : > { %v837_v35 = vpop.f32.mrf.mxu1 }
 0x1ce   : > { %v838_v42 = vadd.f32 %v837_v35, %v2657_v37 }
 0x1cf   : > { %v839_v38 = vpop.f32.mrf.mxu1 }
 0x1d0   : > { %v840_v40 = vadd.f32 %v839_v38, %v2654_v36  ;;  %v916_v49 = vmax.f32 %v838_v42, 0.0 }
 0x1d1   : > { %v841_v39 = vpop.f32.mrf.mxu1 }
 0x1d2   : > { %v842_v41 = vadd.f32 %v841_v39, %v2657_v37  ;;  %v917_v47 = vmax.f32 %v840_v40, 0.0 }
 0x1d3   : > { %v843_v43 = vpop.f32.mrf.mxu1 }
 0x1d4   : > { %v844_v44 = vadd.f32 %v843_v43, %v2654_v36  ;;  %v918_v45 = vmax.f32 %v842_v41, 0.0 }
 0x1d5   : > { %v847_v46 = vpop.f32.mrf.mxu1 }
 0x1d6   : > { %v919_v48 = vmax.f32 %v844_v44, 0.0  ;;  %v948_v52 = vpack.c.bf16 %v918_v45, %v916_v49  ;;  %v848_v56 = vadd.f32 %v847_v46, %v2657_v37 }
 0x1d7   : > { %v849_v50 = vpop.f32.mrf.mxu1 }
 0x1d8   : > { %v949_v51 = vpack.c.bf16 %v919_v48, %v917_v47  ;;  %v850_v54 = vadd.f32 %v849_v50, %v2654_v36  ;;  %v920_v63 = vmax.f32 %v848_v56, 0.0 }
 0x1d9   : > { %v851_v53 = vpop.f32.mrf.mxu1 }
 0x1da   : > { %v852_v55 = vadd.f32 %v851_v53, %v2657_v37  ;;  %1200 = vmatprep.mubr.bf16.mxu0 %v949_v51  ;;  %v921_v61 = vmax.f32 %v850_v54, 0.0 }
 0x1db   : > { %v853_v57 = vpop.f32.mrf.mxu1  ;;  %1201 = vmatmul.mubr.bf16.vlgmr.msra.gmra.mxu0 %v948_v52 }
 0x1dc   : > { %v854_v58 = vadd.f32 %v853_v57, %v2654_v36  ;;  %1927 = vmatpush3.bf16.msra.mxu0 %v2173_v21  ;;  %v922_v59 = vmax.f32 %v852_v55, 0.0 }
 0x1dd   : > { %v857_v60 = vpop.f32.mrf.mxu1  ;;  %1928 = vmatprep.subr.bf16.mxu0 %v2174_v22 }
 0x1de   : > { %v923_v62 = vmax.f32 %v854_v58, 0.0  ;;  %v950_v2 = vpack.c.bf16 %v922_v59, %v920_v63  ;;  %v858_v6 = vadd.f32 %v857_v60, %v2657_v37 }
 0x1df   : > { %v859_v0 = vpop.f32.mrf.mxu1 }
 0x1e0   : > { %v951_v1 = vpack.c.bf16 %v923_v62, %v921_v61  ;;  %1929 = vmatpush3.bf16.msra.mxu0 %v2175_v25  ;;  %v860_v4 = vadd.f32 %v859_v0, %v2654_v36  ;;  %v924_v13 = vmax.f32 %v858_v6, 0.0 }
 0x1e1   : > { %v861_v3 = vpop.f32.mrf.mxu1  ;;  %1930 = vmatprep.subr.bf16.mxu0 %v2176_v26 }
 0x1e2   : > { %v862_v5 = vadd.f32 %v861_v3, %v2657_v37  ;;  %1210 = vmatprep.mubr.bf16.mxu0 %v951_v1  ;;  %v925_v11 = vmax.f32 %v860_v4, 0.0 }
 0x1e3   : > { %v863_v7 = vpop.f32.mrf.mxu1  ;;  %1211 = vmatmul.mubr.bf16.gmra.mxu0 %v950_v2 }
 0x1e4   : > { %v864_v8 = vadd.f32 %v863_v7, %v2654_v36  ;;  %1931 = vmatpush3.bf16.msra.mxu0 %v2177_v29  ;;  %v926_v9 = vmax.f32 %v862_v5, 0.0 }
 0x1e5   : > { %v867_v10 = vpop.f32.mrf.mxu1  ;;  %1932 = vmatprep.subr.bf16.mxu0 %v2178_v30 }
 0x1e6   : > { %v927_v12 = vmax.f32 %v864_v8, 0.0  ;;  %v952_v16 = vpack.c.bf16 %v926_v9, %v924_v13  ;;  %v868_v28 = vadd.f32 %v867_v10, %v2657_v37 }
 0x1e7   : > { %v869_v14 = vpop.f32.mrf.mxu1 }
 0x1e8   : > { %v953_v15 = vpack.c.bf16 %v927_v12, %v925_v11  ;;  %1933 = vmatpush3.bf16.msra.mxu0 %v2179_v31  ;;  %v870_v18 = vadd.f32 %v869_v14, %v2654_v36  ;;  %v928_v29 = vmax.f32 %v868_v28, 0.0 }
 0x1e9   : > { %v871_v17 = vpop.f32.mrf.mxu1  ;;  %1934 = vmatprep.subr.bf16.mxu0 %v2644_v32 }
 0x1ea   : > { %v872_v19 = vadd.f32 %v871_v17, %v2657_v37  ;;  %1220 = vmatprep.mubr.bf16.mxu0 %v953_v15  ;;  %v929_v25 = vmax.f32 %v870_v18, 0.0 }
 0x1eb   : > { %v873_v20 = vpop.f32.mrf.mxu1  ;;  %1221 = vmatmul.mubr.bf16.gmra.mxu0 %v952_v16 }
 0x1ec   : > { %v874_v27 = vadd.f32 %v873_v20, %v2654_v36  ;;  %1935 = vmatpush3.bf16.msra.mxu0 %v2647_v33  ;;  %v930_v21 = vmax.f32 %v872_v19, 0.0 }
 0x1ed   : > { %v877_v22 = vpop.f32.mrf.mxu1 }
 0x1ee   : > { %v931_v26 = vmax.f32 %v874_v27, 0.0  ;;  %v954_v32 = vpack.c.bf16 %v930_v21, %v928_v29  ;;  %v878_v39 = vadd.f32 %v877_v22, %v2657_v37  ;;  %v2184_v29 = vld [vmem:[#allocation5 + $0x48] sm:$0xff]  }
 0x1ef   : > { %v879_v30 = vpop.f32.mrf.mxu1 }
 0x1f0   : > { %v955_v31 = vpack.c.bf16 %v931_v26, %v929_v25  ;;  %v880_v35 = vadd.f32 %v879_v30, %v2654_v36  ;;  %v932_v45 = vmax.f32 %v878_v39, 0.0  ;;  %v2182_v25 = vld [vmem:[#allocation5 + $0x50] sm:$0xff]   ;;  %v2187_v30 = vld [vmem:[#allocation5] sm:$0xff]  }
 0x1f1   : > { %v881_v34 = vpop.f32.mrf.mxu1  ;;  %v2183_v26 = vld [vmem:[#allocation5 + $0x10] sm:$0xff]   ;;  %1936 = vmatprep.subr.bf16.mxu0 %v2182_v25  ;;  %1995 = vmatprep.subr.bf16.mxu1 %v2182_v25 }
 0x1f2   : > { %v882_v38 = vadd.f32 %v881_v34, %v2657_v37  ;;  %1230 = vmatprep.mubr.bf16.mxu0 %v955_v31  ;;  %v933_v43 = vmax.f32 %v880_v35, 0.0  ;;  %1937 = vmatpush3.bf16.msra.mxu0 %v2183_v26  ;;  %v996_v31 = vld [vmem:[%s2825_s6] sm:$0x3] }
 0x1f3   : > { %v883_v40 = vpop.f32.mrf.mxu1  ;;  %1231 = vmatmul.mubr.bf16.gmra.mxu0 %v954_v32  ;;  %2003 = vmatpush3.bf16.msra.mxu1 %v2183_v26  ;;  %v2697_v34 = vrot.slane %v996_v31, %v2599_v23  ;;  %v2700_v35 = vrot.slane %v996_v31, %v2601_v24 }
 0x1f4   : > { %v884_v33 = vadd.f32 %v883_v40, %v2654_v36  ;;  %v934_v41 = vmax.f32 %v882_v38, 0.0  ;;  %1938 = vmatprep.subr.bf16.mxu0 %v2184_v29  ;;  %1996 = vmatprep.subr.bf16.mxu1 %v2184_v29 }
 0x1f5   : > { %v887_v42 = vpop.f32.mrf.mxu1 }
 0x1f6   : > { %v935_v44 = vmax.f32 %v884_v33, 0.0  ;;  %v956_v48 = vpack.c.bf16 %v934_v41, %v932_v45  ;;  %v888_v52 = vadd.f32 %v887_v42, %v2657_v37 }
 0x1f7   : > { %v889_v46 = vpop.f32.mrf.mxu1 }
 0x1f8   : > { %v957_v47 = vpack.c.bf16 %v935_v44, %v933_v43  ;;  %v890_v50 = vadd.f32 %v889_v46, %v2654_v36  ;;  %v936_v59 = vmax.f32 %v888_v52, 0.0 }
 0x1f9   : > { %v891_v49 = vpop.f32.mrf.mxu1 }
 0x1fa   : > { %v892_v51 = vadd.f32 %v891_v49, %v2657_v37  ;;  %1240 = vmatprep.mubr.bf16.mxu0 %v957_v47  ;;  %v937_v57 = vmax.f32 %v890_v50, 0.0 }
 0x1fb   : > { %v893_v53 = vpop.f32.mrf.mxu1  ;;  %1241 = vmatmul.mubr.bf16.gmra.mxu0 %v956_v48 }
 0x1fc   : > { %v894_v54 = vadd.f32 %v893_v53, %v2654_v36  ;;  %v938_v55 = vmax.f32 %v892_v51, 0.0 }
 0x1fd   : > { %v897_v56 = vpop.f32.mrf.mxu1 }
 0x1fe   : > { %v939_v58 = vmax.f32 %v894_v54, 0.0  ;;  %v958_v62 = vpack.c.bf16 %v938_v55, %v936_v59  ;;  %v898_v2 = vadd.f32 %v897_v56, %v2657_v37 }
 0x1ff   : > { %v899_v60 = vpop.f32.mrf.mxu1 }
 0x200   : > { %v959_v61 = vpack.c.bf16 %v939_v58, %v937_v57  ;;  %v900_v0 = vadd.f32 %v899_v60, %v2654_v36  ;;  %v940_v9 = vmax.f32 %v898_v2, 0.0 }
 0x201   : > { %v901_v63 = vpop.f32.mrf.mxu1 }
 0x202   : > { %v902_v1 = vadd.f32 %v901_v63, %v2657_v37  ;;  %1250 = vmatprep.mubr.bf16.mxu0 %v959_v61  ;;  %v941_v7 = vmax.f32 %v900_v0, 0.0 }
 0x203   : > { %v903_v3 = vpop.f32.mrf.mxu1  ;;  %1251 = vmatmul.mubr.bf16.gmra.mxu0 %v958_v62 }
 0x204   : > { %v904_v4 = vadd.f32 %v903_v3, %v2654_v36  ;;  %v942_v5 = vmax.f32 %v902_v1, 0.0 }
 0x205   : > { %v907_v6 = vpop.f32.mrf.mxu1 }
 0x206   : > { %v943_v8 = vmax.f32 %v904_v4, 0.0  ;;  %v960_v12 = vpack.c.bf16 %v942_v5, %v940_v9  ;;  %v908_v16 = vadd.f32 %v907_v6, %v2657_v37 }
 0x207   : > { %v909_v10 = vpop.f32.mrf.mxu1 }
 0x208   : > { %v961_v11 = vpack.c.bf16 %v943_v8, %v941_v7  ;;  %v910_v14 = vadd.f32 %v909_v10, %v2654_v36  ;;  %v944_v27 = vmax.f32 %v908_v16, 0.0 }
 0x209   : > { %v911_v13 = vpop.f32.mrf.mxu1 }
 0x20a   : > { %v912_v15 = vadd.f32 %v911_v13, %v2657_v37  ;;  %1260 = vmatprep.mubr.bf16.mxu0 %v961_v11  ;;  %v945_v28 = vmax.f32 %v910_v14, 0.0  ;;  %v2185_v37 = vld [vmem:[#allocation5 + $0x8] sm:$0xff]  }
 0x20b   : > { %v913_v17 = vpop.f32.mrf.mxu1  ;;  %1261 = vmatmul.mubr.bf16.gmra.mxu0 %v960_v12  ;;  %2004 = vmatpush3.bf16.msra.mxu1 %v2185_v37 }
 0x20c   : > { %v914_v18 = vadd.f32 %v913_v17, %v2654_v36  ;;  %v946_v19 = vmax.f32 %v912_v15, 0.0  ;;  %1939 = vmatpush3.bf16.msra.mxu0 %v2185_v37  ;;  %v2186_v36 = vld [vmem:[#allocation5 + $0x40] sm:$0xff]  }
 0x20d   : > { %1940 = vmatprep.subr.bf16.mxu0 %v2186_v36  ;;  %1997 = vmatprep.subr.bf16.mxu1 %v2186_v36 }
 0x20e   : > { %v947_v20 = vmax.f32 %v914_v18, 0.0  ;;  %v962_v22 = vpack.c.bf16 %v946_v19, %v944_v27 }
 0x20f   : > { %2005 = vmatpush3.bf16.msra.mxu1 %v2187_v30 }
 0x210   : > { %v963_v21 = vpack.c.bf16 %v947_v20, %v945_v28  ;;  %1941 = vmatpush3.bf16.msra.mxu0 %v2187_v30 }
 0x212   : > { %1270 = vmatprep.mubr.bf16.mxu0 %v963_v21 }
 0x213   : > { %1271 = vmatmul.mubr.bf16.gmra.mxu0 %v962_v22 }
 0x29b   : > { %v1202_v32 = vpop.f32.mrf.mxu0 }
 0x29c   : > { %v1203_v41 = vadd.f32 %v1202_v32, %v2700_v35 }
 0x29d   : > { %v1204_v38 = vpop.f32.mrf.mxu0 }
 0x29e   : > { %v1205_v40 = vadd.f32 %v1204_v38, %v2697_v34  ;;  %v1281_v23 = vmax.f32 %v1203_v41, 0.0 }
 0x29f   : > { %v1206_v39 = vpop.f32.mrf.mxu0 }
 0x2a0   : > { %v1207_v33 = vadd.f32 %v1206_v39, %v2700_v35  ;;  %v1282_v46 = vmax.f32 %v1205_v40, 0.0 }
 0x2a1   : > { %v1208_v42 = vpop.f32.mrf.mxu0 }
 0x2a2   : > { %v1209_v43 = vadd.f32 %v1208_v42, %v2697_v34  ;;  %v1283_v44 = vmax.f32 %v1207_v33, 0.0 }
 0x2a3   : > { %v1212_v45 = vpop.f32.mrf.mxu0 }
 0x2a4   : > { %v1284_v47 = vmax.f32 %v1209_v43, 0.0  ;;  %v1313_v24 = vpack.c.bf16 %v1283_v44, %v1281_v23  ;;  %v1213_v53 = vadd.f32 %v1212_v45, %v2700_v35 }
 0x2a5   : > { %v1214_v48 = vpop.f32.mrf.mxu0 }
 0x2a6   : > { %v1314_v49 = vpack.c.bf16 %v1284_v47, %v1282_v46  ;;  %v1215_v51 = vadd.f32 %v1214_v48, %v2697_v34  ;;  %v1285_v60 = vmax.f32 %v1213_v53, 0.0 }
 0x2a7   : > { %v1216_v50 = vpop.f32.mrf.mxu0 }
 0x2a8   : > { %v1217_v52 = vadd.f32 %v1216_v50, %v2700_v35  ;;  %1496 = vmatprep.mubr.bf16.mxu0 %v1314_v49  ;;  %v1286_v58 = vmax.f32 %v1215_v51, 0.0 }
 0x2a9   : > { %v1218_v54 = vpop.f32.mrf.mxu0  ;;  %1497 = vmatmul.mubr.bf16.vlgmr.msra.gmra.mxu0 %v1313_v24 }
 0x2aa   : > { %v1219_v55 = vadd.f32 %v1218_v54, %v2697_v34  ;;  %v1287_v56 = vmax.f32 %v1217_v52, 0.0 }
 0x2ab   : > { %v1222_v57 = vpop.f32.mrf.mxu0 }
 0x2ac   : > { %v1288_v59 = vmax.f32 %v1219_v55, 0.0  ;;  %v1315_v63 = vpack.c.bf16 %v1287_v56, %v1285_v60  ;;  %v1223_v3 = vadd.f32 %v1222_v57, %v2700_v35 }
 0x2ad   : > { %v1224_v61 = vpop.f32.mrf.mxu0 }
 0x2ae   : > { %v1316_v62 = vpack.c.bf16 %v1288_v59, %v1286_v58  ;;  %v1225_v1 = vadd.f32 %v1224_v61, %v2697_v34  ;;  %v1289_v10 = vmax.f32 %v1223_v3, 0.0 }
 0x2af   : > { %v1226_v0 = vpop.f32.mrf.mxu0 }
 0x2b0   : > { %v1227_v2 = vadd.f32 %v1226_v0, %v2700_v35  ;;  %1504 = vmatprep.mubr.bf16.mxu0 %v1316_v62  ;;  %v1290_v8 = vmax.f32 %v1225_v1, 0.0 }
 0x2b1   : > { %v1228_v4 = vpop.f32.mrf.mxu0  ;;  %1505 = vmatmul.mubr.bf16.gmra.mxu0 %v1315_v63 }
 0x2b2   : > { %v1229_v5 = vadd.f32 %v1228_v4, %v2697_v34  ;;  %v1291_v6 = vmax.f32 %v1227_v2, 0.0 }
 0x2b3   : > { %v1232_v7 = vpop.f32.mrf.mxu0 }
 0x2b4   : > { %v1292_v9 = vmax.f32 %v1229_v5, 0.0  ;;  %v1317_v13 = vpack.c.bf16 %v1291_v6, %v1289_v10  ;;  %v1233_v17 = vadd.f32 %v1232_v7, %v2700_v35 }
 0x2b5   : > { %v1234_v11 = vpop.f32.mrf.mxu0 }
 0x2b6   : > { %v1318_v12 = vpack.c.bf16 %v1292_v9, %v1290_v8  ;;  %v1235_v15 = vadd.f32 %v1234_v11, %v2697_v34  ;;  %v1293_v22 = vmax.f32 %v1233_v17, 0.0 }
 0x2b7   : > { %v1236_v14 = vpop.f32.mrf.mxu0 }
 0x2b8   : > { %v1237_v16 = vadd.f32 %v1236_v14, %v2700_v35  ;;  %1512 = vmatprep.mubr.bf16.mxu0 %v1318_v12  ;;  %v1294_v27 = vmax.f32 %v1235_v15, 0.0 }
 0x2b9   : > { %v1238_v18 = vpop.f32.mrf.mxu0  ;;  %1513 = vmatmul.mubr.bf16.gmra.mxu0 %v1317_v13 }
 0x2ba   : > { %v1239_v19 = vadd.f32 %v1238_v18, %v2697_v34  ;;  %v1295_v28 = vmax.f32 %v1237_v16, 0.0 }
 0x2bb   : > { %v1242_v20 = vpop.f32.mrf.mxu0 }
 0x2bc   : > { %v1296_v21 = vmax.f32 %v1239_v19, 0.0  ;;  %v1319_v29 = vpack.c.bf16 %v1295_v28, %v1293_v22  ;;  %v1243_v31 = vadd.f32 %v1242_v20, %v2700_v35 }
 0x2bd   : > { %v1244_v25 = vpop.f32.mrf.mxu0 }
 0x2be   : > { %v1320_v26 = vpack.c.bf16 %v1296_v21, %v1294_v27  ;;  %v1245_v36 = vadd.f32 %v1244_v25, %v2697_v34  ;;  %v1297_v42 = vmax.f32 %v1243_v31, 0.0 }
 0x2bf   : > { %v1246_v37 = vpop.f32.mrf.mxu0 }
 0x2c0   : > { %v1247_v30 = vadd.f32 %v1246_v37, %v2700_v35  ;;  %1520 = vmatprep.mubr.bf16.mxu1 %v1320_v26  ;;  %v1298_v33 = vmax.f32 %v1245_v36, 0.0 }
 0x2c1   : > { %v1248_v32 = vpop.f32.mrf.mxu0  ;;  %1521 = vmatmul.mubr.bf16.vlgmr.msra.gmra.mxu1 %v1319_v29 }
 0x2c2   : > { %v1249_v38 = vadd.f32 %v1248_v32, %v2697_v34  ;;  %v1299_v39 = vmax.f32 %v1247_v30, 0.0 }
 0x2c3   : > { %v1252_v40 = vpop.f32.mrf.mxu0 }
 0x2c4   : > { %v1300_v41 = vmax.f32 %v1249_v38, 0.0  ;;  %v1321_v45 = vpack.c.bf16 %v1299_v39, %v1297_v42  ;;  %v1253_v48 = vadd.f32 %v1252_v40, %v2700_v35 }
 0x2c5   : > { %v1254_v43 = vpop.f32.mrf.mxu0 }
 0x2c6   : > { %v1322_v44 = vpack.c.bf16 %v1300_v41, %v1298_v33  ;;  %v1255_v47 = vadd.f32 %v1254_v43, %v2697_v34  ;;  %v1301_v54 = vmax.f32 %v1253_v48, 0.0 }
 0x2c7   : > { %v1256_v46 = vpop.f32.mrf.mxu0 }
 0x2c8   : > { %v1257_v23 = vadd.f32 %v1256_v46, %v2700_v35  ;;  %1528 = vmatprep.mubr.bf16.mxu1 %v1322_v44  ;;  %v1302_v52 = vmax.f32 %v1255_v47, 0.0 }
 0x2c9   : > { %v1258_v49 = vpop.f32.mrf.mxu0  ;;  %1529 = vmatmul.mubr.bf16.gmra.mxu1 %v1321_v45 }
 0x2ca   : > { %v1259_v24 = vadd.f32 %v1258_v49, %v2697_v34  ;;  %v1303_v50 = vmax.f32 %v1257_v23, 0.0 }
 0x2cb   : > { %v1262_v51 = vpop.f32.mrf.mxu0 }
 0x2cc   : > { %v1304_v53 = vmax.f32 %v1259_v24, 0.0  ;;  %v1323_v57 = vpack.c.bf16 %v1303_v50, %v1301_v54  ;;  %v1263_v61 = vadd.f32 %v1262_v51, %v2700_v35 }
 0x2cd   : > { %v1264_v55 = vpop.f32.mrf.mxu0 }
 0x2ce   : > { %v1324_v56 = vpack.c.bf16 %v1304_v53, %v1302_v52  ;;  %v1265_v59 = vadd.f32 %v1264_v55, %v2697_v34  ;;  %v1305_v4 = vmax.f32 %v1263_v61, 0.0 }
 0x2cf   : > { %v1266_v58 = vpop.f32.mrf.mxu0 }
 0x2d0   : > { %v1267_v60 = vadd.f32 %v1266_v58, %v2700_v35  ;;  %1536 = vmatprep.mubr.bf16.mxu1 %v1324_v56  ;;  %v1306_v2 = vmax.f32 %v1265_v59, 0.0 }
 0x2d1   : > { %v1268_v62 = vpop.f32.mrf.mxu0  ;;  %1537 = vmatmul.mubr.bf16.gmra.mxu1 %v1323_v57 }
 0x2d2   : > { %v1269_v63 = vadd.f32 %v1268_v62, %v2697_v34  ;;  %v1307_v0 = vmax.f32 %v1267_v60, 0.0 }
 0x2d3   : > { %v1272_v1 = vpop.f32.mrf.mxu0 }
 0x2d4   : > { %v1308_v3 = vmax.f32 %v1269_v63, 0.0  ;;  %v1325_v7 = vpack.c.bf16 %v1307_v0, %v1305_v4  ;;  %v1273_v11 = vadd.f32 %v1272_v1, %v2700_v35 }
 0x2d5   : > { %v1274_v5 = vpop.f32.mrf.mxu0 }
 0x2d6   : > { %v1326_v6 = vpack.c.bf16 %v1308_v3, %v1306_v2  ;;  %v1275_v9 = vadd.f32 %v1274_v5, %v2697_v34  ;;  %v1309_v17 = vmax.f32 %v1273_v11, 0.0 }
 0x2d7   : > { %v1276_v8 = vpop.f32.mrf.mxu0 }
 0x2d8   : > { %v1277_v10 = vadd.f32 %v1276_v8, %v2700_v35  ;;  %1544 = vmatprep.mubr.bf16.mxu1 %v1326_v6  ;;  %v1310_v15 = vmax.f32 %v1275_v9, 0.0  ;;  %v2738_v35 = vld [vmem:[%s2827_s8] ss:$0 sm:$0xff] }
 0x2d9   : > { %v1278_v12 = vpop.f32.mrf.mxu0  ;;  %1545 = vmatmul.mubr.bf16.gmra.mxu1 %v1325_v7 }
 0x2da   : > { %v1279_v13 = vadd.f32 %v1278_v12, %v2697_v34  ;;  %v1311_v14 = vmax.f32 %v1277_v10, 0.0 }
 0x2dc   : > { %v1312_v16 = vmax.f32 %v1279_v13, 0.0  ;;  %v1327_v19 = vpack.c.bf16 %v1311_v14, %v1309_v17 }
 0x2de   : > { %v1328_v18 = vpack.c.bf16 %v1312_v16, %v1310_v15 }
 0x2e0   : > { %1552 = vmatprep.mubr.bf16.mxu1 %v1328_v18 }
 0x2e1   : > { %1553 = vmatmul.mubr.bf16.gmra.mxu1 %v1327_v19 }
 0x369   : > { %v1942_v28 = vpop.f32.mrf.mxu0 }
 0x36b   : > { %v1943_v20 = vpop.f32.mrf.mxu0 }
 0x36c   : > { %v1944_v21 = vadd.f32 %v1943_v20, %v1942_v28 }
 0x36d   : > { %v1945_v27 = vpop.f32.mrf.mxu0 }
 0x36e   : > { %v1499_v26 = vadd.f32 %v1944_v21, %v2738_v35 }
 0x36f   : > { %v1946_v34 = vpop.f32.mrf.mxu0 }
 0x370   : > { %v1947_v22 = vadd.f32 %v1946_v34, %v1945_v27 }
 0x371   : > { %v1948_v25 = vpop.f32.mrf.mxu0 }
 0x372   : > { %v1502_v29 = vadd.f32 %v1947_v22, %v2738_v35 }
 0x373   : > { %v1949_v37 = vpop.f32.mrf.mxu0 }
 0x374   : > { %v1882_v36 = vpack.c.bf16 %v1502_v29, %v1499_v26  ;;  %v1950_v31 = vadd.f32 %v1949_v37, %v1948_v25 }
 0x375   : > { %v1951_v30 = vpop.f32.mrf.mxu0 }
 0x376   : > { %1883 = vst [vmem:[%s2744_s17] sm:$0xff] %v1882_v36   ;;  %v1507_v40 = vadd.f32 %v1950_v31, %v2738_v35 }
 0x377   : > { %v1952_v32 = vpop.f32.mrf.mxu0 }
 0x378   : > { %v1953_v38 = vadd.f32 %v1952_v32, %v1951_v30 }
 0x379   : > { %v1954_v39 = vpop.f32.mrf.mxu0 }
 0x37a   : > { %v1510_v33 = vadd.f32 %v1953_v38, %v2738_v35 }
 0x37b   : > { %v1955_v41 = vpop.f32.mrf.mxu0 }
 0x37c   : > { %v1887_v42 = vpack.c.bf16 %v1510_v33, %v1507_v40  ;;  %v1956_v44 = vadd.f32 %v1955_v41, %v1954_v39 }
 0x37d   : > { %v1957_v43 = vpop.f32.mrf.mxu0 }
 0x37e   : > { %1919 = vst [vmem:[%s2744_s17 + $0x8] sm:$0xff] %v1887_v42   ;;  %v1515_v23 = vadd.f32 %v1956_v44, %v2738_v35 }
 0x37f   : > { %v1958_v45 = vpop.f32.mrf.mxu0 }
 0x380   : > { %v1959_v46 = vadd.f32 %v1958_v45, %v1957_v43 }
 0x381   : > { %v1960_v47 = vpop.f32.mrf.mxu1 }
 0x382   : > { %v1518_v48 = vadd.f32 %v1959_v46, %v2738_v35 }
 0x383   : > { %v1961_v49 = vpop.f32.mrf.mxu1 }
 0x384   : > { %v1892_v24 = vpack.c.bf16 %v1518_v48, %v1515_v23  ;;  %v1962_v51 = vadd.f32 %v1961_v49, %v1960_v47 }
 0x385   : > { %v1963_v50 = vpop.f32.mrf.mxu1 }
 0x386   : > { %1920 = vst [vmem:[%s2744_s17 + $0x10] sm:$0xff] %v1892_v24   ;;  %v1523_v55 = vadd.f32 %v1962_v51, %v2738_v35 }
 0x387   : > { %v1964_v52 = vpop.f32.mrf.mxu1 }
 0x388   : > { %v1965_v53 = vadd.f32 %v1964_v52, %v1963_v50 }
 0x389   : > { %v1966_v54 = vpop.f32.mrf.mxu1 }
 0x38a   : > { %v1526_v56 = vadd.f32 %v1965_v53, %v2738_v35 }
 0x38b   : > { %v1967_v57 = vpop.f32.mrf.mxu1 }
 0x38c   : > { %v1897_v58 = vpack.c.bf16 %v1526_v56, %v1523_v55  ;;  %v1968_v60 = vadd.f32 %v1967_v57, %v1966_v54 }
 0x38d   : > { %v1969_v59 = vpop.f32.mrf.mxu1 }
 0x38e   : > { %1921 = vst [vmem:[%s2744_s17 + $0x18] sm:$0xff] %v1897_v58   ;;  %v1531_v0 = vadd.f32 %v1968_v60, %v2738_v35 }
 0x38f   : > { %v1970_v61 = vpop.f32.mrf.mxu1 }
 0x390   : > { %v1971_v62 = vadd.f32 %v1970_v61, %v1969_v59 }
 0x391   : > { %v1972_v63 = vpop.f32.mrf.mxu1 }
 0x392   : > { %v1534_v1 = vadd.f32 %v1971_v62, %v2738_v35 }
 0x393   : > { %v1973_v2 = vpop.f32.mrf.mxu1 }
 0x394   : > { %v1902_v3 = vpack.c.bf16 %v1534_v1, %v1531_v0  ;;  %v1974_v5 = vadd.f32 %v1973_v2, %v1972_v63 }
 0x395   : > { %v1975_v4 = vpop.f32.mrf.mxu1 }
 0x396   : > { %1922 = vst [vmem:[%s2744_s17 + $0x20] sm:$0xff] %v1902_v3   ;;  %v1539_v9 = vadd.f32 %v1974_v5, %v2738_v35 }
 0x397   : > { %v1976_v6 = vpop.f32.mrf.mxu1 }
 0x398   : > { %v1977_v7 = vadd.f32 %v1976_v6, %v1975_v4 }
 0x399   : > { %v1978_v8 = vpop.f32.mrf.mxu1 }
 0x39a   : > { %v1542_v10 = vadd.f32 %v1977_v7, %v2738_v35 }
 0x39b   : > { %v1979_v11 = vpop.f32.mrf.mxu1 }
 0x39c   : > { %v1907_v12 = vpack.c.bf16 %v1542_v10, %v1539_v9  ;;  %v1980_v14 = vadd.f32 %v1979_v11, %v1978_v8 }
 0x39d   : > { %v1981_v13 = vpop.f32.mrf.mxu1 }
 0x39e   : > { %1923 = vst [vmem:[%s2744_s17 + $0x28] sm:$0xff] %v1907_v12   ;;  %v1547_v18 = vadd.f32 %v1980_v14, %v2738_v35 }
 0x39f   : > { %v1982_v15 = vpop.f32.mrf.mxu1 }
 0x3a0   : > { %v1983_v16 = vadd.f32 %v1982_v15, %v1981_v13 }
 0x3a1   : > { %v1984_v17 = vpop.f32.mrf.mxu1 }
 0x3a2   : > { %v1550_v19 = vadd.f32 %v1983_v16, %v2738_v35 }
 0x3a3   : > { %v1985_v28 = vpop.f32.mrf.mxu1 }
 0x3a4   : > { %v1912_v20 = vpack.c.bf16 %v1550_v19, %v1547_v18  ;;  %v1986_v21 = vadd.f32 %v1985_v28, %v1984_v17 }
 0x3a5   : > { %v1987_v27 = vpop.f32.mrf.mxu1 }
 0x3a6   : > { %1924 = vst [vmem:[%s2744_s17 + $0x30] sm:$0xff] %v1912_v20   ;;  %v1555_v25 = vadd.f32 %v1986_v21, %v2738_v35 }
 0x3a7   : > { %v1988_v34 = vpop.f32.mrf.mxu1 }
 0x3a8   : > { %v1989_v22 = vadd.f32 %v1988_v34, %v1987_v27 }
 0x3aa   : > { %v1558_v26 = vadd.f32 %v1989_v22, %v2738_v35 }
 0x3ac   : > { %v1917_v29 = vpack.c.bf16 %v1558_v26, %v1555_v25 }
 0x3ae   : > { %1925 = vst [vmem:[%s2744_s17 + $0x38] sm:$0xff] %v1917_v29  }
 0x3af   : > { %2253 = shalt.err (!%p2250_p3)
}
 0x3b0   : > { %s2254_s29 = scalar_lea.hbm %s2772_s18, 1024  ;;  %s2258_s17 = scalar_lea.hbm %s2828_s9, 2048 }
 0x3b1   : > { %p2255_p2 = scmp.ne.s32.totalorder %s2772_s18, %s2254_s29  ;;  %p2259_p6 = scmp.lt.s32.totalorder %s2772_s18, %s2828_s9 }
 0x3b2   : > { %p2260_p9 = scmp.lt.s32.totalorder %s2258_s17, %s2254_s29 }
 0x3b3   : > { %p2256_p4 = pnand %p2255_p2, %p2408_p5 }
 0x3b4   : > { %p2261_p12 = por %p2260_p9, %p2259_p6 }
 0x3b5   : > { %p2257_p13 = pneg %p2256_p4 }
 0x3b7   : > { %p2262_p10 = pnand %p2261_p12, %p2257_p13 }
 0x3b9   : > { %2265 = shalt.err (!%p2262_p10)
}
 0x3ba   : > { %s2318_s23 = smov 64   ;;  %s2319_s13 = smov 4  }
 0x3bb   : > { %2014 = dma.vmem_to_hbm [thread:$0]  (%p2408_p5), %s2774_s25, 1024, %s2772_s18, %s2779_s21, %s2318_s23, %s2318_s23, %s2319_s13  }
 0x3bc PF: > { %p2031_p7 = scmp.ge.s32.totalorder %s2308_s12, 2  ;;  %s1670_s24 = sand.u32 1, %s2296_s30  }
 0x3bd   : > { %p2839_p8 = scmp.ne.s32.totalorder %s2832_s20, 0  ;;  %s1671_s28 = scalar_lea.sflag [#allocation4], %s1670_s24 }
 0x3bf   : > { %p2024_p11 = pnand %p2031_p7, %p2839_p8 }
 0x3c1   : > { %p2025_p0 = pneg %p2024_p11 }
 0x3c3   : > { %2291 = dma.done.wait (%p2025_p0), %s1671_s28, 1024  }
 0x3c4   : > { %2293 = vsyncadd (%p2025_p0), %s1671_s28, 4294966272  ;;  %s2840_s26 = sld [smem:[#allocation11_spill]]  ;;  %p21_p1 = scmp.ge.s32.totalorder %s2395_s15, 4  }
 0x3c5   : > { %s2841_s30 = smov %s2300_s10  ;;  %s2842_s10 = smov %s2304_s11 }
 0x3c6   : > { %s2844_s12 = smov %s2395_s15  ;;  %23 = sbr.rel (!%p21_p1) target bundleno = 5 (0x5), region = 100 }
 0x3ca   : > { %s2843_s11 = smov %s2840_s26 }
 0x3cb   :  { %1676 = vsyncpa [#allocation3], 1 }
 0x3cc   :  { %1678 = vsyncpa [#allocation3 + $0x1], 1 }
 0x3cd   :  { %1679 = vsyncpa [#allocation6], 1 }
 0x3ce   :  { %1680 = vsyncpa [#allocation4], 1 }
 0x3cf   :  { %1682 = vsyncpa [#allocation4 + $0x1], 1 }

</bundles_post_ra>
